<compile_context>
chip_gen: v7x
topology: tpu7x:2x2x1
jax: 0.10.0
libtpu: 0.0.40
codegen_flags: <defaults>
</compile_context>

<pallas_src>
import jax
import jax.numpy as jnp
from jax.experimental import pallas as pl
from jax.experimental.pallas import tpu as pltpu

LANE = 128
VMEM_LIMIT = 48 * 1024 * 1024      # safe cap on v5e/v6e (128 MiB) and v7x (64 MiB)
ACC_BUDGET = 96 * 1024             # live f32 accumulator (vregs) per Pass-1 tile
TILE_BUDGET = 6 * 1024 * 1024      # per-tile streamed HBM<->VMEM byte budget


def _round_up(n, m):
    return ((n + m - 1) // m) * m


def _largest_divisor_leq(n, cap):
    cap = int(max(1, min(n, cap)))
    for d in range(cap, 0, -1):
        if n % d == 0:
            return d
    return 1


# --------------------------------- kernels ----------------------------------
def _conv_stats_kernel(p_ref, w_ref, conv_ref, stats_ref):
    """One row-tile of the folded-K conv + partial BN statistics.

    p_ref    : (th, W, Kp)  bf16 im2col patches (batch dim squeezed)
    w_ref    : (Kp, Co)     bf16 folded 3x3 weights
    conv_ref : (th, W, Co)  bf16 conv output tile (bias dropped -- cancelled by BN)
    stats_ref: (2, Co)      f32 [sum, sum-of-squares] over this tile
    """
    th, W, Kp = p_ref.shape
    Co = w_ref.shape[-1]
    # Single bf16 MXU matmul with f32 accumulation.  The reshape only merges the
    # two major (sublane) dims of an already lane-dense value -> layout-preserving.
    acc = jnp.dot(p_ref[...].reshape(th * W, Kp), w_ref[...],
                  preferred_element_type=jnp.float32)
    conv_ref[...] = acc.reshape(th, W, Co).astype(conv_ref.dtype)
    # One-pass partial stats for training-mode BatchNorm (f32 accumulation).
    # NOTE: finalized as E[x^2]-mean^2; can cancel when |mean| >> std, fine at
    # these magnitudes (clamped at zero in the finalize step).
    stats_ref[0:1, :] = jnp.sum(acc, axis=0, keepdims=True)
    stats_ref[1:2, :] = jnp.sum(acc * acc, axis=0, keepdims=True)


def _bn_relu_kernel(scale_ref, shift_ref, conv_ref, out_ref):
    """Streamed affine BN + ReLU over one lane-dense (th, W, Co) tile."""
    y = conv_ref[...].astype(jnp.float32) * scale_ref[...] + shift_ref[...]
    out_ref[...] = jnp.maximum(y, 0.0).astype(out_ref.dtype)


# ------------------------------ block wrapper --------------------------------
def _im2col_patches(x, Kp):
    """(B,H,W,C) -> (B,H,W,Kp) bf16: +1 halo pad, 9 shifted 3x3 taps folded into
    the channel (K) axis, zero-padded to lane-dense Kp."""
    B, H, W, C = x.shape
    xp = jnp.pad(x, ((0, 0), (1, 1), (1, 1), (0, 0)))
    taps = [xp[:, dy:dy + H, dx:dx + W, :] for dy in range(3) for dx in range(3)]
    p = jnp.concatenate(taps, axis=-1)                       # (B, H, W, 9C)
    if Kp > 9 * C:
        p = jnp.pad(p, ((0, 0), (0, 0), (0, 0), (0, Kp - 9 * C)))
    return p.astype(jnp.bfloat16)


def conv_bn_relu_block(x, w, gamma, beta, *, eps=1e-5, out_dtype=jnp.float32):
    """Conv2d(3,1,1; bias folded into BN) + BatchNorm2d(train) + ReLU.

    x: (B, H, W, Ci) real (un-padded) channels, f32 or bf16.
    w: (3, 3, Ci, Co) HWIO.   gamma, beta: (Co,).
    Returns (B, H, W, Co_p) in out_dtype, channel-padded to a multiple of 128
    (padded channels come out exactly zero).
    """
    B, H, W, Ci = x.shape
    Co = w.shape[-1]
    Kc = 9 * Ci
    Kp = _round_up(Kc, LANE)
    Co_p = _round_up(Co, LANE)

    # ---- XLA glue: im2col patches, folded/padded weights, padded BN params. ----
    # TODO(synk): for large Ci (9*Ci >> 128) switch to a 9-tap in-kernel form with
    # hoisted dx shifts instead of this im2col, to avoid a ~9x HBM blow-up.
    patches = _im2col_patches(x, Kp)                                    # bf16
    w_flat = w.astype(jnp.float32).reshape(Kc, Co)
    w_flat = jnp.pad(w_flat, ((0, Kp - Kc), (0, Co_p - Co))).astype(jnp.bfloat16)
    gamma_p = jnp.pad(gamma.astype(jnp.float32), (0, Co_p - Co))
    beta_p = jnp.pad(beta.astype(jnp.float32), (0, Co_p - Co))

    # ---- Pass 1: folded-K conv + per-(image, row-tile) partial stats. ----
    # Row tile: keep the live f32 accumulator under ACC_BUDGET (vregs) and the
    # streamed tile bytes under TILE_BUDGET; largest divisor of H that fits.
    rows_acc = max(1, ACC_BUDGET // (W * Co_p * 4))
    rows_io = max(1, TILE_BUDGET // (W * (Kp + Co_p) * 2))
    th1 = _largest_divisor_leq(H, min(rows_acc, rows_io))
    n_h1 = H // th1

    conv_out, stats = pl.pallas_call(
        _conv_stats_kernel,
        grid=(B, n_h1),
        in_specs=[
            pl.BlockSpec((None, th1, W, Kp), lambda b, h: (b, h, 0, 0)),
            # Grid-invariant weights (constant index map); tiny at these channel
            # counts, so default double-buffering costs nothing.
            pl.BlockSpec((Kp, Co_p), lambda b, h: (0, 0)),
        ],
        out_specs=[
            pl.BlockSpec((None, th1, W, Co_p), lambda b, h: (b, h, 0, 0)),
            pl.BlockSpec((None, None, 2, Co_p), lambda b, h: (b, h, 0, 0)),
        ],
        out_shape=[
            jax.ShapeDtypeStruct((B, H, W, Co_p), jnp.bfloat16),
            jax.ShapeDtypeStruct((B, n_h1, 2, Co_p), jnp.float32),
        ],
        compiler_params=pltpu.CompilerParams(
            dimension_semantics=("parallel", "parallel"),
            vmem_limit_bytes=VMEM_LIMIT,
        ),
    )(patches, w_flat)

    # ---- BN finalize, hoisted out of the per-tile path (tiny (Co_p,) math). ----
    count = float(B * H * W)
    s = jnp.sum(stats[:, :, 0, :], axis=(0, 1))
    ss = jnp.sum(stats[:, :, 1, :], axis=(0, 1))
    mean = s / count
    var = jnp.maximum(ss / count - mean * mean, 0.0)
    inv_std = jax.lax.rsqrt(var + eps)
    scale = (gamma_p * inv_std).reshape(1, Co_p)
    shift = (beta_p - mean * gamma_p * inv_std).reshape(1, Co_p)

    # ---- Pass 2: streamed FMA + ReLU at HBM roofline (bf16 in). ----
    out_bytes = jnp.dtype(out_dtype).itemsize
    rows2 = max(1, TILE_BUDGET // (W * Co_p * (2 + out_bytes)))
    th2 = _largest_divisor_leq(H, rows2)
    n_h2 = H // th2

    out = pl.pallas_call(
        _bn_relu_kernel,
        grid=(B, n_h2),
        in_specs=[
            pl.BlockSpec((1, Co_p), lambda b, h: (0, 0)),
            pl.BlockSpec((1, Co_p), lambda b, h: (0, 0)),
            pl.BlockSpec((None, th2, W, Co_p), lambda b, h: (b, h, 0, 0)),
        ],
        out_specs=pl.BlockSpec((None, th2, W, Co_p), lambda b, h: (b, h, 0, 0)),
        out_shape=jax.ShapeDtypeStruct((B, H, W, Co_p), out_dtype),
        compiler_params=pltpu.CompilerParams(
            dimension_semantics=("parallel", "parallel"),
            vmem_limit_bytes=VMEM_LIMIT,
        ),
    )(scale, shift, conv_out)
    return out


# --------------------------------- forward -----------------------------------
def make_unet_conv2_params(key, in_size, out_size):
    """Deterministic synthetic parameters (shapes match the PyTorch module)."""
    k = jax.random.split(key, 4)
    return {
        # conv weights stored HWIO = (3, 3, Cin, Cout)
        "w1": jax.random.normal(k[0], (3, 3, in_size, out_size), jnp.float32) * 0.1,
        "b1": jax.random.normal(k[1], (out_size,), jnp.float32) * 0.1,
        "gamma1": jnp.ones((out_size,), jnp.float32),
        "beta1": jnp.zeros((out_size,), jnp.float32),
        "w2": jax.random.normal(k[2], (3, 3, out_size, out_size), jnp.float32) * 0.1,
        "b2": jax.random.normal(k[3], (out_size,), jnp.float32) * 0.1,
        "gamma2": jnp.ones((out_size,), jnp.float32),
        "beta2": jnp.zeros((out_size,), jnp.float32),
    }


@jax.jit
def unet_conv2_forward(x_nchw, params):
    """UnetConv2(is_batchnorm=True) forward. Input/output NCHW (PyTorch layout).

    Conv biases b1/b2 are intentionally unused by the kernels: training-mode
    BatchNorm subtracts the batch mean, which cancels a per-channel bias exactly.
    """
    Cout = params["w1"].shape[-1]
    x = jnp.transpose(x_nchw, (0, 2, 3, 1))                            # NHWC
    # Block 1: bf16 intermediate (feeds block 2's bf16 MXU anyway).
    y = conv_bn_relu_block(x, params["w1"], params["gamma1"], params["beta1"],
                           out_dtype=jnp.bfloat16)                     # (B,H,W,Co_p)
    # Block 2: final output in f32.
    y = conv_bn_relu_block(y[..., :Cout], params["w2"], params["gamma2"],
                           params["beta2"], out_dtype=jnp.float32)
    return jnp.transpose(y[..., :Cout], (0, 3, 1, 2))                  # NCHW


# ----------------------------- pure-JAX reference -----------------------------
def _reference_block(x_nhwc, w, b, gamma, beta, eps=1e-5):
    y = jax.lax.conv_general_dilated(
        x_nhwc, w, window_strides=(1, 1), padding="SAME",
        dimension_numbers=("NHWC", "HWIO", "NHWC"))
    y = y + b
    mean = y.mean(axis=(0, 1, 2))
    var = ((y - mean) ** 2).mean(axis=(0, 1, 2))
    y = (y - mean) * jax.lax.rsqrt(var + eps) * gamma + beta
    return jnp.maximum(y, 0.0)


def _reference_forward(x_nchw, params):
    x = jnp.transpose(x_nchw, (0, 2, 3, 1))
    y = _reference_block(x, params["w1"], params["b1"], params["gamma1"], params["beta1"])
    y = _reference_block(y, params["w2"], params["b2"], params["gamma2"], params["beta2"])
    return jnp.transpose(y, (0, 3, 1, 2))


if __name__ == "__main__":
    B, Cin, Cout, H, W = 2, 4, 8, 16, 16

    key = jax.random.PRNGKey(0)
    kx, kp = jax.random.split(key)
    x = jax.random.normal(kx, (B, Cin, H, W), jnp.float32)   # NCHW like PyTorch
    params = make_unet_conv2_params(kp, Cin, Cout)

    out = jax.block_until_ready(unet_conv2_forward(x, params))
    ref = jax.block_until_ready(_reference_forward(x, params))

    assert out.shape == (B, Cout, H, W), out.shape
    max_err = float(jnp.abs(out - ref).max())
    # bf16 MXU operands + bf16 intermediates vs. an all-f32 reference.
    assert max_err < 8e-2, max_err
    print("KERNEL_OK")
</pallas_src>

<mosaic_0001>
module attributes {stable_mosaic.version = 11 : i64} {
  func.func @_conv_stats_kernel(%arg0: i32, %arg1: i32, %arg2: memref<1x8x16x128xbf16, #tpu.memory_space<vmem>>, %arg3: memref<128x128xbf16, #tpu.memory_space<vmem>>, %arg4: memref<1x8x16x128xbf16, #tpu.memory_space<vmem>>, %arg5: memref<1x1x2x128xf32, #tpu.memory_space<vmem>>) attributes {dimension_semantics = [#tpu.dimension_semantics<parallel>, #tpu.dimension_semantics<parallel>], iteration_bounds = array<i64: 2, 2>, scalar_prefetch = 0 : i64, scratch_operands = 0 : i64, tpu.core_type = #tpu.core_type<tc>, window_params = [{transform_indices = @transform_0, window_bounds = array<i64: 1, 8, 16, 128>}, {pipeline_mode = #tpu.pipeline_mode<synchronous>, transform_indices = @transform_1, window_bounds = array<i64: 128, 128>}, {transform_indices = @transform_2, window_bounds = array<i64: 1, 8, 16, 128>}, {transform_indices = @transform_3, window_bounds = array<i64: 1, 1, 2, 128>}]} {
    %c0 = arith.constant 0 : index
    %c0_0 = arith.constant 0 : index
    %c0_1 = arith.constant 0 : index
    %c0_2 = arith.constant 0 : index
    %0 = vector.load %arg2[%c0, %c0_0, %c0_1, %c0_2] : memref<1x8x16x128xbf16, #tpu.memory_space<vmem>>, vector<1x8x16x128xbf16>
    %1 = vector.shape_cast %0 : vector<1x8x16x128xbf16> to vector<8x16x128xbf16>
    %2 = vector.shape_cast %1 : vector<8x16x128xbf16> to vector<128x128xbf16>
    %c0_3 = arith.constant 0 : index
    %c0_4 = arith.constant 0 : index
    %3 = vector.load %arg3[%c0_3, %c0_4] : memref<128x128xbf16, #tpu.memory_space<vmem>>, vector<128x128xbf16>
    %cst = arith.constant dense<0.000000e+00> : vector<128x128xf32>
    %4 = tpu.matmul %2, %3, %cst {dimension_numbers = #tpu.dot_dimension_numbers<[1], [0], [0], [1], [0, 0, 1, 1], [], []>} : vector<128x128xbf16>, vector<128x128xbf16>, vector<128x128xf32> -> vector<128x128xf32>
    %5 = vector.shape_cast %4 : vector<128x128xf32> to vector<8x16x128xf32>
    %6 = arith.truncf %5 : vector<8x16x128xf32> to vector<8x16x128xbf16>
    %c0_5 = arith.constant 0 : index
    %c0_6 = arith.constant 0 : index
    %c0_7 = arith.constant 0 : index
    %c0_8 = arith.constant 0 : index
    %7 = vector.load %arg4[%c0_5, %c0_6, %c0_7, %c0_8] : memref<1x8x16x128xbf16, #tpu.memory_space<vmem>>, vector<1x8x16x128xbf16>
    %8 = vector.shape_cast %7 : vector<1x8x16x128xbf16> to vector<8x16x128xbf16>
    %9 = vector.shape_cast %6 : vector<8x16x128xbf16> to vector<1x8x16x128xbf16>
    tpu.vector_store %arg4[%c0_5, %c0_6, %c0_7, %c0_8], %9 {strides = array<i32>} : memref<1x8x16x128xbf16, #tpu.memory_space<vmem>>, vector<1x8x16x128xbf16>,
    %cst_9 = arith.constant dense<0.000000e+00> : vector<128xf32>
    %10 = vector.multi_reduction <add>, %4, %cst_9 [0] : vector<128x128xf32> to vector<128xf32>
    %11 = vector.shape_cast %10 : vector<128xf32> to vector<1x128xf32>
    %c0_10 = arith.constant 0 : index
    %c0_11 = arith.constant 0 : index
    %c0_12 = arith.constant 0 : index
    %c0_13 = arith.constant 0 : index
    %12 = vector.load %arg5[%c0_10, %c0_11, %c0_12, %c0_13] : memref<1x1x2x128xf32, #tpu.memory_space<vmem>>, vector<1x1x1x128xf32>
    %13 = vector.shape_cast %12 : vector<1x1x1x128xf32> to vector<1x128xf32>
    %14 = vector.shape_cast %11 : vector<1x128xf32> to vector<1x1x1x128xf32>
    tpu.vector_store %arg5[%c0_10, %c0_11, %c0_12, %c0_13], %14 {strides = array<i32>} : memref<1x1x2x128xf32, #tpu.memory_space<vmem>>, vector<1x1x1x128xf32>,
    %15 = arith.mulf %4, %4 : vector<128x128xf32>
    %cst_14 = arith.constant dense<0.000000e+00> : vector<128xf32>
    %16 = vector.multi_reduction <add>, %15, %cst_14 [0] : vector<128x128xf32> to vector<128xf32>
    %17 = vector.shape_cast %16 : vector<128xf32> to vector<1x128xf32>
    %c0_15 = arith.constant 0 : index
    %c0_16 = arith.constant 0 : index
    %c1 = arith.constant 1 : index
    %c0_17 = arith.constant 0 : index
    %18 = vector.load %arg5[%c0_15, %c0_16, %c1, %c0_17] : memref<1x1x2x128xf32, #tpu.memory_space<vmem>>, vector<1x1x1x128xf32>
    %19 = vector.shape_cast %18 : vector<1x1x1x128xf32> to vector<1x128xf32>
    %20 = vector.shape_cast %17 : vector<1x128xf32> to vector<1x1x1x128xf32>
    tpu.vector_store %arg5[%c0_15, %c0_16, %c1, %c0_17], %20 {strides = array<i32>} : memref<1x1x2x128xf32, #tpu.memory_space<vmem>>, vector<1x1x1x128xf32>,
    return
  }
  func.func @transform_0(%arg0: i32, %arg1: i32) -> (i32, i32, i32, i32) {
    %c0_i32 = arith.constant 0 : i32
    %c0_i32_0 = arith.constant 0 : i32
    %c0_i32_1 = arith.constant 0 : i32
    return %arg0, %arg1, %c0_i32, %c0_i32_0 : i32, i32, i32, i32
  }
  func.func @transform_1(%arg0: i32, %arg1: i32) -> (i32, i32) {
    %c0_i32 = arith.constant 0 : i32
    %c0_i32_0 = arith.constant 0 : i32
    %c0_i32_1 = arith.constant 0 : i32
    return %c0_i32, %c0_i32_0 : i32, i32
  }
  func.func @transform_2(%arg0: i32, %arg1: i32) -> (i32, i32, i32, i32) {
    %c0_i32 = arith.constant 0 : i32
    %c0_i32_0 = arith.constant 0 : i32
    %c0_i32_1 = arith.constant 0 : i32
    return %arg0, %arg1, %c0_i32, %c0_i32_0 : i32, i32, i32, i32
  }
  func.func @transform_3(%arg0: i32, %arg1: i32) -> (i32, i32, i32, i32) {
    %c0_i32 = arith.constant 0 : i32
    %c0_i32_0 = arith.constant 0 : i32
    %c0_i32_1 = arith.constant 0 : i32
    return %arg0, %arg1, %c0_i32, %c0_i32_0 : i32, i32, i32, i32
  }
}

module attributes {stable_mosaic.version = 11 : i64} {
  func.func @_bn_relu_kernel(%arg0: i32, %arg1: i32, %arg2: memref<1x128xf32, #tpu.memory_space<vmem>>, %arg3: memref<1x128xf32, #tpu.memory_space<vmem>>, %arg4: memref<1x16x16x128xbf16, #tpu.memory_space<vmem>>, %arg5: memref<1x16x16x128xbf16, #tpu.memory_space<vmem>>) attributes {dimension_semantics = [#tpu.dimension_semantics<parallel>, #tpu.dimension_semantics<parallel>], iteration_bounds = array<i64: 2, 1>, scalar_prefetch = 0 : i64, scratch_operands = 0 : i64, tpu.core_type = #tpu.core_type<tc>, window_params = [{pipeline_mode = #tpu.pipeline_mode<synchronous>, transform_indices = @transform_0, window_bounds = array<i64: 1, 128>}, {pipeline_mode = #tpu.pipeline_mode<synchronous>, transform_indices = @transform_1, window_bounds = array<i64: 1, 128>}, {transform_indices = @transform_2, window_bounds = array<i64: 1, 16, 16, 128>}, {transform_indices = @transform_3, window_bounds = array<i64: 1, 16, 16, 128>}]} {
    %c0 = arith.constant 0 : index
    %c0_0 = arith.constant 0 : index
    %c0_1 = arith.constant 0 : index
    %c0_2 = arith.constant 0 : index
    %0 = vector.load %arg4[%c0, %c0_0, %c0_1, %c0_2] : memref<1x16x16x128xbf16, #tpu.memory_space<vmem>>, vector<1x16x16x128xbf16>
    %1 = vector.shape_cast %0 : vector<1x16x16x128xbf16> to vector<16x16x128xbf16>
    %2 = arith.extf %1 : vector<16x16x128xbf16> to vector<16x16x128xf32>
    %c0_3 = arith.constant 0 : index
    %c0_4 = arith.constant 0 : index
    %3 = vector.load %arg2[%c0_3, %c0_4] : memref<1x128xf32, #tpu.memory_space<vmem>>, vector<1x128xf32>
    %4 = vector.shape_cast %3 : vector<1x128xf32> to vector<1x1x128xf32>
    %5 = vector.broadcast %4 : vector<1x1x128xf32> to vector<16x16x128xf32>
    %6 = arith.mulf %2, %5 : vector<16x16x128xf32>
    %c0_5 = arith.constant 0 : index
    %c0_6 = arith.constant 0 : index
    %7 = vector.load %arg3[%c0_5, %c0_6] : memref<1x128xf32, #tpu.memory_space<vmem>>, vector<1x128xf32>
    %8 = vector.shape_cast %7 : vector<1x128xf32> to vector<1x1x128xf32>
    %9 = vector.broadcast %8 : vector<1x1x128xf32> to vector<16x16x128xf32>
    %10 = arith.addf %6, %9 : vector<16x16x128xf32>
    %cst = arith.constant 0.000000e+00 : f32
    %11 = vector.broadcast %cst : f32 to vector<16x16x128xf32>
    %12 = arith.maximumf %10, %11 : vector<16x16x128xf32>
    %13 = arith.truncf %12 : vector<16x16x128xf32> to vector<16x16x128xbf16>
    %c0_7 = arith.constant 0 : index
    %c0_8 = arith.constant 0 : index
    %c0_9 = arith.constant 0 : index
    %c0_10 = arith.constant 0 : index
    %14 = vector.load %arg5[%c0_7, %c0_8, %c0_9, %c0_10] : memref<1x16x16x128xbf16, #tpu.memory_space<vmem>>, vector<1x16x16x128xbf16>
    %15 = vector.shape_cast %14 : vector<1x16x16x128xbf16> to vector<16x16x128xbf16>
    %16 = vector.shape_cast %13 : vector<16x16x128xbf16> to vector<1x16x16x128xbf16>
    tpu.vector_store %arg5[%c0_7, %c0_8, %c0_9, %c0_10], %16 {strides = array<i32>} : memref<1x16x16x128xbf16, #tpu.memory_space<vmem>>, vector<1x16x16x128xbf16>,
    return
  }
  func.func @transform_0(%arg0: i32, %arg1: i32) -> (i32, i32) {
    %c0_i32 = arith.constant 0 : i32
    %c0_i32_0 = arith.constant 0 : i32
    %c0_i32_1 = arith.constant 0 : i32
    return %c0_i32, %c0_i32_0 : i32, i32
  }
  func.func @transform_1(%arg0: i32, %arg1: i32) -> (i32, i32) {
    %c0_i32 = arith.constant 0 : i32
    %c0_i32_0 = arith.constant 0 : i32
    %c0_i32_1 = arith.constant 0 : i32
    return %c0_i32, %c0_i32_0 : i32, i32
  }
  func.func @transform_2(%arg0: i32, %arg1: i32) -> (i32, i32, i32, i32) {
    %c0_i32 = arith.constant 0 : i32
    %c0_i32_0 = arith.constant 0 : i32
    %c0_i32_1 = arith.constant 0 : i32
    return %arg0, %arg1, %c0_i32, %c0_i32_0 : i32, i32, i32, i32
  }
  func.func @transform_3(%arg0: i32, %arg1: i32) -> (i32, i32, i32, i32) {
    %c0_i32 = arith.constant 0 : i32
    %c0_i32_0 = arith.constant 0 : i32
    %c0_i32_1 = arith.constant 0 : i32
    return %arg0, %arg1, %c0_i32, %c0_i32_0 : i32, i32, i32, i32
  }
}

module attributes {stable_mosaic.version = 11 : i64} {
  func.func @_bn_relu_kernel(%arg0: i32, %arg1: i32, %arg2: memref<1x128xf32, #tpu.memory_space<vmem>>, %arg3: memref<1x128xf32, #tpu.memory_space<vmem>>, %arg4: memref<1x16x16x128xbf16, #tpu.memory_space<vmem>>, %arg5: memref<1x16x16x128xf32, #tpu.memory_space<vmem>>) attributes {dimension_semantics = [#tpu.dimension_semantics<parallel>, #tpu.dimension_semantics<parallel>], iteration_bounds = array<i64: 2, 1>, scalar_prefetch = 0 : i64, scratch_operands = 0 : i64, tpu.core_type = #tpu.core_type<tc>, window_params = [{pipeline_mode = #tpu.pipeline_mode<synchronous>, transform_indices = @transform_0, window_bounds = array<i64: 1, 128>}, {pipeline_mode = #tpu.pipeline_mode<synchronous>, transform_indices = @transform_1, window_bounds = array<i64: 1, 128>}, {transform_indices = @transform_2, window_bounds = array<i64: 1, 16, 16, 128>}, {transform_indices = @transform_3, window_bounds = array<i64: 1, 16, 16, 128>}]} {
    %c0 = arith.constant 0 : index
    %c0_0 = arith.constant 0 : index
    %c0_1 = arith.constant 0 : index
    %c0_2 = arith.constant 0 : index
    %0 = vector.load %arg4[%c0, %c0_0, %c0_1, %c0_2] : memref<1x16x16x128xbf16, #tpu.memory_space<vmem>>, vector<1x16x16x128xbf16>
    %1 = vector.shape_cast %0 : vector<1x16x16x128xbf16> to vector<16x16x128xbf16>
    %2 = arith.extf %1 : vector<16x16x128xbf16> to vector<16x16x128xf32>
    %c0_3 = arith.constant 0 : index
    %c0_4 = arith.constant 0 : index
    %3 = vector.load %arg2[%c0_3, %c0_4] : memref<1x128xf32, #tpu.memory_space<vmem>>, vector<1x128xf32>
    %4 = vector.shape_cast %3 : vector<1x128xf32> to vector<1x1x128xf32>
    %5 = vector.broadcast %4 : vector<1x1x128xf32> to vector<16x16x128xf32>
    %6 = arith.mulf %2, %5 : vector<16x16x128xf32>
    %c0_5 = arith.constant 0 : index
    %c0_6 = arith.constant 0 : index
    %7 = vector.load %arg3[%c0_5, %c0_6] : memref<1x128xf32, #tpu.memory_space<vmem>>, vector<1x128xf32>
    %8 = vector.shape_cast %7 : vector<1x128xf32> to vector<1x1x128xf32>
    %9 = vector.broadcast %8 : vector<1x1x128xf32> to vector<16x16x128xf32>
    %10 = arith.addf %6, %9 : vector<16x16x128xf32>
    %cst = arith.constant 0.000000e+00 : f32
    %11 = vector.broadcast %cst : f32 to vector<16x16x128xf32>
    %12 = arith.maximumf %10, %11 : vector<16x16x128xf32>
    %c0_7 = arith.constant 0 : index
    %c0_8 = arith.constant 0 : index
    %c0_9 = arith.constant 0 : index
    %c0_10 = arith.constant 0 : index
    %13 = vector.load %arg5[%c0_7, %c0_8, %c0_9, %c0_10] : memref<1x16x16x128xf32, #tpu.memory_space<vmem>>, vector<1x16x16x128xf32>
    %14 = vector.shape_cast %13 : vector<1x16x16x128xf32> to vector<16x16x128xf32>
    %15 = vector.shape_cast %12 : vector<16x16x128xf32> to vector<1x16x16x128xf32>
    tpu.vector_store %arg5[%c0_7, %c0_8, %c0_9, %c0_10], %15 {strides = array<i32>} : memref<1x16x16x128xf32, #tpu.memory_space<vmem>>, vector<1x16x16x128xf32>,
    return
  }
  func.func @transform_0(%arg0: i32, %arg1: i32) -> (i32, i32) {
    %c0_i32 = arith.constant 0 : i32
    %c0_i32_0 = arith.constant 0 : i32
    %c0_i32_1 = arith.constant 0 : i32
    return %c0_i32, %c0_i32_0 : i32, i32
  }
  func.func @transform_1(%arg0: i32, %arg1: i32) -> (i32, i32) {
    %c0_i32 = arith.constant 0 : i32
    %c0_i32_0 = arith.constant 0 : i32
    %c0_i32_1 = arith.constant 0 : i32
    return %c0_i32, %c0_i32_0 : i32, i32
  }
  func.func @transform_2(%arg0: i32, %arg1: i32) -> (i32, i32, i32, i32) {
    %c0_i32 = arith.constant 0 : i32
    %c0_i32_0 = arith.constant 0 : i32
    %c0_i32_1 = arith.constant 0 : i32
    return %arg0, %arg1, %c0_i32, %c0_i32_0 : i32, i32, i32, i32
  }
  func.func @transform_3(%arg0: i32, %arg1: i32) -> (i32, i32, i32, i32) {
    %c0_i32 = arith.constant 0 : i32
    %c0_i32_0 = arith.constant 0 : i32
    %c0_i32_1 = arith.constant 0 : i32
    return %arg0, %arg1, %c0_i32, %c0_i32_0 : i32, i32, i32, i32
  }
}

</mosaic_0001>

<bundles_post_ra>
// kernel: unet_conv2_forward.4
= control target key start
LH: loop header
LB: loop body
LE: loop exit
PB: predicated region body
PF: predicated region fallthrough
CT: control target
= control target key end

     0   :  { %s1040_s12 = smov 0   ;;  %s1042_s13 = smov 0   ;;  %s1154_s0 = inlined_call_operand.vmem [shape: bf16[2,16,16,128], index: 0, kind: input, shape index: {}]   ;;  %s1155_s1 = inlined_call_operand.vmem [shape: bf16[128,128], index: 1, kind: input, shape index: {}]   ;;  %s1156_s2 = inlined_call_operand.vmem [shape: bf16[2,16,16,128], index: 2, kind: output, shape index: {0}]   ;;  %s1157_s3 = inlined_call_operand.vmem [shape: f32[2,2,2,128], index: 3, kind: output, shape index: {1}]  }
   0x1   :  { %s1044_s14 = smov 0   ;;  %s1046_s15 = smov 0  }
   0x2   :  { %s1048_s16 = smov 0  }
   0x3 LB: > { %s23_s17 = sadd.s32 1, %s1010_s14  ;;  %s26_s18 = sadd.s32 1, %s1014_s15  ;;  %s1018_s16 = sphi %s1048_s16, %s14_s16   ;;  %s1014_s15 = sphi %s1046_s15, %s1161_s15   ;;  %s1010_s14 = sphi %s1044_s14, %s1160_s14   ;;  %s1006_s13 = sphi %s1042_s13, %s1159_s13   ;;  %s1002_s12 = sphi %s1040_s12, %s1158_s12  }
   0x4   : > { %p24_p0 = scmp.ge.s32.totalorder %s23_s17, 2  ;;  %p752_p1 = scmp.ge.s32.totalorder %s1018_s16, 1 }
   0x5   : > { %p164_p2 = scmp.lt.s32.totalorder %s1018_s16, 5 }
   0x6   : > { %s1163_s17 = smov (%p24_p0, %s23_s17), 0  ;;  %s1165_s18 = smov (!%p24_p0, %s26_s18), %s1014_s15 }
   0x7   : > { %p165_p3 = pnand %p752_p1, %p164_p2  ;;  %p28_p4 = scmp.ge.s32.totalorder %s1165_s18, 2 }
   0x8   : > { %v964_v0 = vld [vmem:[%s1155_s1] sm:$0xff] (!%p165_p3)   ;;  %s753_s21 = sshll.u32 (!%p165_p3), %s1002_s12, 3  ;;  %v965_v1 = vld [vmem:[%s1155_s1 + $0x8] sm:$0xff] (!%p165_p3)   ;;  %p207_p5 = scmp.lt.s32.totalorder (!%p165_p3), %s1006_s13, 1  ;;  %v966_v2 = vld [vmem:[%s1155_s1 + $0x10] sm:$0xff] (!%p165_p3)  }
   0x9   : > { %s1167_s18 = smov (%p28_p4, %s1165_s18), 0  ;;  %168 = sbr.rel (%p165_p3) target bundleno = 302 (0x12e), region = 28 }
   0xa   : > { %876 = vmatprep.subr.bf16.mxu0 (!%p165_p3), %v964_v0  ;;  %908 = vmatprep.subr.bf16.mxu1 (!%p165_p3), %v964_v0  ;;  %p209_p6 = scmp.lt.s32.totalorder (!%p165_p3), %s753_s21, 15  ;;  %v967_v3 = vld [vmem:[%s1155_s1 + $0x18] sm:$0xff] (!%p165_p3)   ;;  %v968_v5 = vld [vmem:[%s1155_s1 + $0x20] sm:$0xff] (!%p165_p3)   ;;  %v969_v7 = vld [vmem:[%s1155_s1 + $0x28] sm:$0xff] (!%p165_p3)   ;;  %p230_p7 = scmp.lt.s32.totalorder (!%p165_p3), %s1002_s12, 1 }
   0xb   : > { %877 = vmatpush3.bf16.msra.mxu0 (!%p165_p3), %v964_v0  ;;  %916 = vmatpush3.bf16.msra.mxu1 (!%p165_p3), %v964_v0  ;;  %v970_v8 = vld [vmem:[%s1155_s1 + $0x30] sm:$0xff] (!%p165_p3)   ;;  %v971_v9 = vld [vmem:[%s1155_s1 + $0x38] sm:$0xff] (!%p165_p3)  }
   0xc   : > { %878 = vmatprep.subr.bf16.mxu0 (!%p165_p3), %v965_v1  ;;  %909 = vmatprep.subr.bf16.mxu1 (!%p165_p3), %v965_v1 }
   0xf   : > { %879 = vmatpush3.bf16.msra.mxu0 (!%p165_p3), %v965_v1  ;;  %917 = vmatpush3.bf16.msra.mxu1 (!%p165_p3), %v965_v1 }
  0x10   : > { %s1169_s13 = smov (!%p207_p5, %s1006_s13), 1  ;;  %s1171_s21 = smov (!%p209_p6, %s753_s21), 15  ;;  %880 = vmatprep.subr.bf16.mxu0 %v966_v2  ;;  %910 = vmatprep.subr.bf16.mxu1 %v966_v2 }
  0x11   : > { %s755_s26 = sshll.u32 %s1169_s13, 5  ;;  %s754_s27 = sshll.u32 %s1171_s21, 1 }
  0x12   : > { %s1085_s28 = sadd.s32 %s755_s26, %s754_s27  ;;  %s1173_s12 = smov (!%p230_p7, %s1002_s12), 1 }
  0x13   : > { %s756_s4 = sshll.u32 %s1085_s28, 2  ;;  %881 = vmatpush3.bf16.msra.mxu0 %v966_v2  ;;  %918 = vmatpush3.bf16.msra.mxu1 %v966_v2  ;;  %s761_s26 = sshll.u32 %s1169_s13, 1 }
  0x14   : > { %s1096_s7 = scalar_lea.vmem %s1154_s0, %s756_s4  ;;  %882 = vmatprep.subr.bf16.mxu0 %v967_v3  ;;  %911 = vmatprep.subr.bf16.mxu1 %v967_v3  ;;  %s1123_s25 = scalar_lea.vmem %s1156_s2, %s756_s4 }
  0x15   : > { %v972_v4 = vld [vmem:[%s1096_s7] sm:$0xff]   ;;  %v973_v10 = vld [vmem:[%s1096_s7 + $0x8] sm:$0xff]   ;;  %v974_v12 = vld [vmem:[%s1096_s7 + $0x10] sm:$0xff]   ;;  %s233_s27 = sadd.s32 %s761_s26, %s1173_s12 }
  0x16   : > { %892 = vmatprep.mubr.bf16.mxu0 %v972_v4  ;;  %v976_v6 = vld [vmem:[%s1096_s7 + $0x20] sm:$0xff]   ;;  %v977_v11 = vld [vmem:[%s1096_s7 + $0x28] sm:$0xff]   ;;  %v978_v13 = vld [vmem:[%s1096_s7 + $0x30] sm:$0xff]   ;;  %s762_s28 = sshll.u32 %s233_s27, 1 }
  0x17   : > { %883 = vmatpush3.bf16.msra.mxu0 %v967_v3  ;;  %919 = vmatpush3.bf16.msra.mxu1 %v967_v3  ;;  %v975_v14 = vld [vmem:[%s1096_s7 + $0x18] sm:$0xff]   ;;  %s235_s4 = scalar_lea.vmem %s1157_s3, %s762_s28 }
  0x18   : > { %884 = vmatprep.subr.bf16.mxu0 %v968_v5  ;;  %912 = vmatprep.subr.bf16.mxu1 %v968_v5  ;;  %v979_v15 = vld [vmem:[%s1096_s7 + $0x38] sm:$0xff]  }
  0x19   : > { %900 = vmatprep.mubr.bf16.mxu1 %v976_v6 }
  0x1b   : > { %885 = vmatpush3.bf16.msra.mxu0 %v968_v5  ;;  %920 = vmatpush3.bf16.msra.mxu1 %v968_v5 }
  0x1c   : > { %886 = vmatprep.subr.bf16.mxu0 %v969_v7  ;;  %913 = vmatprep.subr.bf16.mxu1 %v969_v7 }
  0x1f   : > { %887 = vmatpush3.bf16.msra.mxu0 %v969_v7  ;;  %921 = vmatpush3.bf16.msra.mxu1 %v969_v7 }
  0x20   : > { %888 = vmatprep.subr.bf16.mxu0 %v970_v8  ;;  %914 = vmatprep.subr.bf16.mxu1 %v970_v8 }
  0x23   : > { %889 = vmatpush3.bf16.msra.mxu0 %v970_v8  ;;  %922 = vmatpush3.bf16.msra.mxu1 %v970_v8 }
  0x24   : > { %890 = vmatprep.subr.bf16.mxu0 %v971_v9  ;;  %915 = vmatprep.subr.bf16.mxu1 %v971_v9 }
  0x27   : > { %891 = vmatpush3.bf16.msra.mxu0 %v971_v9  ;;  %923 = vmatpush3.bf16.msra.mxu1 %v971_v9 }
  0x2a   : > { %893 = vmatmul.mubr.bf16.vlgmr.msra.gmra.mrb[0].mxu0 %v973_v10  ;;  %901 = vmatmul.mubr.bf16.vlgmr.msra.gmra.mrb[0].mxu1 %v977_v11 }
  0x2b   : > { %896 = vmatprep.mubr.bf16.mxu0 %v974_v12  ;;  %904 = vmatprep.mubr.bf16.mxu1 %v978_v13 }
  0x32   : > { %897 = vmatmul.mubr.bf16.gmra.mrb[4].mxu0 %v975_v14  ;;  %905 = vmatmul.mubr.bf16.gmra.mrb[4].mxu1 %v979_v15 }
  0xfd   : > { %v894_v16 = vpop.f32.mrb[0].mxu0  ;;  %v902_v17 = vpop.f32.mrb[0].mxu1 }
  0xfe   : > { %v399_v18 = vpop.f32.mrb[1].mxu0  ;;  %v431_v19 = vpop.f32.mrb[1].mxu1  ;;  %v566_v31 = vmul.f32 %v894_v16, %v894_v16  ;;  %v574_v3 = vmul.f32 %v902_v17, %v902_v17 }
  0xff   : > { %v895_v20 = vpop.f32.mrb[2].mxu0  ;;  %v903_v21 = vpop.f32.mrb[2].mxu1  ;;  %v564_v22 = vmul.f32 %v399_v18, %v399_v18  ;;  %v572_v61 = vmul.f32 %v431_v19, %v431_v19 }
 0x100   : > { %v821_v23 = vpack.c.bf16 %v895_v20, %v894_v16  ;;  %v402_v24 = vpop.f32.mrb[3].mxu0  ;;  %v841_v25 = vpack.c.bf16 %v903_v21, %v902_v17  ;;  %v434_v26 = vpop.f32.mrb[3].mxu1  ;;  %v567_v34 = vmul.f32 %v895_v20, %v895_v20  ;;  %v575_v6 = vmul.f32 %v903_v21, %v903_v21 }
 0x101   : > { %v816_v27 = vpack.c.bf16 %v402_v24, %v399_v18  ;;  %v542_v28 = vadd.f32 %v402_v24, %v399_v18  ;;  %v565_v29 = vmul.f32 %v402_v24, %v402_v24  ;;  %v836_v30 = vpack.c.bf16 %v434_v26, %v431_v19 }
 0x102   : > { %853 = vst [vmem:[%s1123_s25 + $0x8] sm:$0xff] %v821_v23   ;;  %857 = vst [vmem:[%s1123_s25 + $0x28] sm:$0xff] %v841_v25   ;;  %v573_v2 = vmul.f32 %v434_v26, %v434_v26 }
 0x103   : > { %817 = vst [vmem:[%s1123_s25] sm:$0xff] %v816_v27   ;;  %v543_v32 = vadd.f32 %v894_v16, %v542_v28  ;;  %v580_v33 = vadd.f32 %v565_v29, %v564_v22  ;;  %856 = vst [vmem:[%s1123_s25 + $0x20] sm:$0xff] %v836_v30  }
 0x105   : > { %v581_v35 = vadd.f32 %v580_v33, %v566_v31  ;;  %v898_v36 = vpop.f32.mrb[4].mxu0  ;;  %v544_v37 = vadd.f32 %v895_v20, %v543_v32  ;;  %v906_v38 = vpop.f32.mrb[4].mxu1 }
 0x106   : > { %v415_v39 = vpop.f32.mrb[5].mxu0  ;;  %v447_v40 = vpop.f32.mrb[5].mxu1  ;;  %v570_v55 = vmul.f32 %v898_v36, %v898_v36  ;;  %v578_v15 = vmul.f32 %v906_v38, %v906_v38 }
 0x107   : > { %v545_v41 = vadd.f32 %v544_v37, %v415_v39  ;;  %v568_v42 = vmul.f32 %v415_v39, %v415_v39  ;;  %v582_v43 = vadd.f32 %v581_v35, %v567_v34  ;;  %v899_v44 = vpop.f32.mrb[6].mxu0  ;;  %v907_v45 = vpop.f32.mrb[6].mxu1  ;;  %v576_v9 = vmul.f32 %v447_v40, %v447_v40 }
 0x108   : > { %v831_v46 = vpack.c.bf16 %v899_v44, %v898_v36  ;;  %v418_v47 = vpop.f32.mrb[7].mxu0  ;;  %v851_v48 = vpack.c.bf16 %v907_v45, %v906_v38  ;;  %v450_v49 = vpop.f32.mrb[7].mxu1  ;;  %v571_v58 = vmul.f32 %v899_v44, %v899_v44 }
 0x109   : > { %v583_v50 = vadd.f32 %v582_v43, %v568_v42  ;;  %v826_v51 = vpack.c.bf16 %v418_v47, %v415_v39  ;;  %v546_v52 = vadd.f32 %v545_v41, %v418_v47  ;;  %v569_v53 = vmul.f32 %v418_v47, %v418_v47 }
 0x10a   : > { %855 = vst [vmem:[%s1123_s25 + $0x18] sm:$0xff] %v831_v46   ;;  %859 = vst [vmem:[%s1123_s25 + $0x38] sm:$0xff] %v851_v48   ;;  %v846_v54 = vpack.c.bf16 %v450_v49, %v447_v40  ;;  %v577_v14 = vmul.f32 %v450_v49, %v450_v49 }
 0x10b   : > { %854 = vst [vmem:[%s1123_s25 + $0x10] sm:$0xff] %v826_v51   ;;  %v547_v56 = vadd.f32 %v898_v36, %v546_v52  ;;  %v584_v57 = vadd.f32 %v583_v50, %v569_v53 }
 0x10c   : > { %858 = vst [vmem:[%s1123_s25 + $0x30] sm:$0xff] %v846_v54  }
 0x10d   : > { %v585_v59 = vadd.f32 %v584_v57, %v570_v55  ;;  %v548_v60 = vadd.f32 %v899_v44, %v547_v56 }
 0x10f   : > { %v549_v62 = vadd.f32 %v548_v60, %v431_v19  ;;  %v586_v63 = vadd.f32 %v585_v59, %v571_v58  ;;  %v579_v19 = vmul.f32 %v907_v45, %v907_v45 }
 0x111   : > { %v587_v0 = vadd.f32 %v586_v63, %v572_v61  ;;  %v550_v1 = vadd.f32 %v549_v62, %v434_v26 }
 0x113   : > { %v551_v4 = vadd.f32 %v902_v17, %v550_v1  ;;  %v588_v5 = vadd.f32 %v587_v0, %v573_v2 }
 0x115   : > { %v589_v7 = vadd.f32 %v588_v5, %v574_v3  ;;  %v552_v8 = vadd.f32 %v903_v21, %v551_v4 }
 0x117   : > { %v553_v10 = vadd.f32 %v552_v8, %v447_v40  ;;  %v590_v11 = vadd.f32 %v589_v7, %v575_v6 }
 0x119   : > { %v591_v12 = vadd.f32 %v590_v11, %v576_v9  ;;  %v554_v13 = vadd.f32 %v553_v10, %v450_v49 }
 0x11b   : > { %v555_v16 = vadd.f32 %v906_v38, %v554_v13  ;;  %v592_v18 = vadd.f32 %v591_v12, %v577_v14 }
 0x11d   : > { %v556_v20 = vadd.f32 %v907_v45, %v555_v16  ;;  %v593_v22 = vadd.f32 %v592_v18, %v578_v15 }
 0x11f   : > { %v557_v17 = vrot.slane %v556_v20, 4  ;;  %v594_v23 = vadd.f32 %v593_v22, %v579_v19 }
 0x121   : > { %v558_v24 = vadd.f32 %v557_v17, %v556_v20  ;;  %v595_v25 = vrot.slane %v594_v23, 4 }
 0x123   : > { %v559_v21 = vrot.slane %v558_v24, 2  ;;  %v596_v26 = vadd.f32 %v595_v25, %v594_v23 }
 0x125   : > { %v560_v27 = vadd.f32 %v559_v21, %v558_v24  ;;  %v597_v28 = vrot.slane %v596_v26, 2 }
 0x127   : > { %v561_v29 = vrot.slane %v560_v27, 1  ;;  %v598_v30 = vadd.f32 %v597_v28, %v596_v26 }
 0x129   : > { %v562_v31 = vadd.f32 %v561_v29, %v560_v27  ;;  %v599_v32 = vrot.slane %v598_v30, 1 }
 0x12b   : > { %563 = vst [vmem:[%s235_s4] sm:$0x1] %v562_v31  ;;  %v600_v33 = vadd.f32 %v599_v32, %v598_v30 }
 0x12d   : > { %601 = vst [vmem:[%s235_s4 + $0x1] sm:$0x1] %v600_v33 }
 0x12e PF: > { %s14_s16 = sadd.s32 1, %s1018_s16   ;;  %s1158_s12 = smov %s1010_s14 }
 0x12f   : > { %p11_p8 = scmp.ge.s32.totalorder %s14_s16, 6   ;;  %s1159_s13 = smov %s1014_s15 }
 0x130   : > { %s1160_s14 = smov %s1163_s17  ;;  %s1161_s15 = smov %s1167_s18 }
 0x131   :  { %13 = sbr.rel (!%p11_p8) target bundleno = 3 (0x3), region = 70 }

// kernel: unet_conv2_forward.5
= control target key start
LH: loop header
LB: loop body
LE: loop exit
PB: predicated region body
PF: predicated region fallthrough
CT: control target
= control target key end

     0   :  { %s966_s12 = smov 0   ;;  %s968_s13 = smov 0   ;;  %s1116_s0 = inlined_call_operand.vmem [shape: f32[1,128], index: 0, kind: input, shape index: {}]   ;;  %s1117_s1 = inlined_call_operand.vmem [shape: f32[1,128], index: 1, kind: input, shape index: {}]   ;;  %s1118_s2 = inlined_call_operand.vmem [shape: bf16[2,16,16,128], index: 2, kind: input, shape index: {}]   ;;  %s1119_s3 = inlined_call_operand.vmem [shape: bf16[2,16,16,128], index: 3, kind: output, shape index: {}]  }
   0x1   :  { %s970_s14 = smov 0  }
   0x2 LB: > { %s25_s15 = sadd.s32 1, %s940_s13  ;;  %p649_p0 = scmp.ge.s32.totalorder %s944_s14, 1  ;;  %s944_s14 = sphi %s970_s14, %s13_s14   ;;  %s940_s13 = sphi %s968_s13, %s1121_s13   ;;  %s936_s12 = sphi %s966_s12, %s1120_s12  }
   0x3   : > { %p27_p1 = scmp.ge.s32.totalorder %s25_s15, 2  ;;  %p159_p2 = scmp.lt.s32.totalorder %s944_s14, 3 }
   0x5   : > { %s1123_s15 = smov (%p27_p1, %s25_s15), 0  ;;  %p160_p3 = pnand %p649_p0, %p159_p2 }
   0x6   : > { %p194_p4 = scmp.lt.s32.totalorder (!%p160_p3), %s936_s12, 1  ;;  %v997_v0 = vld [vmem:[%s1116_s0] ss:$0 sm:$0xff] (!%p160_p3) }
   0x7   : > { %163 = sbr.rel (%p160_p3) target bundleno = 60 (0x3c), region = 32  ;;  %v1006_v9 = vld [vmem:[%s1117_s1] ss:$0 sm:$0xff] (!%p160_p3) }
   0xe   : > { %s1125_s12 = smov (!%p194_p4, %s936_s12), 1 }
   0xf   : > { %s690_s16 = sshll.u32 %s1125_s12, 7 }
  0x10   : > { %s992_s19 = scalar_lea.vmem %s1118_s2, %s690_s16  ;;  %s1031_s26 = scalar_lea.vmem %s1119_s3, %s690_s16 }
  0x11   : > { %v725_v1 = vld [vmem:[%s992_s19] sm:$0xff]   ;;  %v868_v2 = vld [vmem:[%s992_s19 + $0x8] sm:$0xff]   ;;  %v869_v3 = vld [vmem:[%s992_s19 + $0x10] sm:$0xff]  }
  0x12   : > { %v726_v4 = vunpack.c.l.bf16 %v725_v1  ;;  %v727_v5 = vunpack.c.h.bf16 %v725_v1  ;;  %v730_v6 = vunpack.c.l.bf16 %v868_v2  ;;  %v731_v7 = vunpack.c.h.bf16 %v868_v2  ;;  %v870_v8 = vld [vmem:[%s992_s19 + $0x18] sm:$0xff]   ;;  %v871_v30 = vld [vmem:[%s992_s19 + $0x20] sm:$0xff]   ;;  %v872_v35 = vld [vmem:[%s992_s19 + $0x28] sm:$0xff]  }
  0x13   : > { %v734_v10 = vunpack.c.l.bf16 %v869_v3  ;;  %v735_v11 = vunpack.c.h.bf16 %v869_v3  ;;  %v738_v12 = vunpack.c.l.bf16 %v870_v8  ;;  %v739_v13 = vunpack.c.h.bf16 %v870_v8  ;;  %v873_v40 = vld [vmem:[%s992_s19 + $0x30] sm:$0xff]   ;;  %v874_v45 = vld [vmem:[%s992_s19 + $0x38] sm:$0xff]   ;;  %v875_v3 = vld [vmem:[%s992_s19 + $0x40] sm:$0xff]  }
  0x14   : > { %v286_v14 = vmul.f32 %v726_v4, %v997_v0  ;;  %v287_v15 = vmul.f32 %v727_v5, %v997_v0  ;;  %v288_v16 = vmul.f32 %v730_v6, %v997_v0  ;;  %v289_v17 = vmul.f32 %v731_v7, %v997_v0 }
  0x15   : > { %v290_v18 = vmul.f32 %v734_v10, %v997_v0  ;;  %v291_v19 = vmul.f32 %v735_v11, %v997_v0  ;;  %v292_v20 = vmul.f32 %v738_v12, %v997_v0  ;;  %v293_v21 = vmul.f32 %v739_v13, %v997_v0  ;;  %v876_v13 = vld [vmem:[%s992_s19 + $0x48] sm:$0xff]  }
  0x16   : > { %v325_v22 = vadd.f32 %v1006_v9, %v286_v14  ;;  %v326_v23 = vadd.f32 %v1006_v9, %v287_v15  ;;  %v327_v24 = vadd.f32 %v1006_v9, %v288_v16  ;;  %v328_v25 = vadd.f32 %v1006_v9, %v289_v17 }
  0x17   : > { %v329_v26 = vadd.f32 %v1006_v9, %v290_v18  ;;  %v330_v27 = vadd.f32 %v1006_v9, %v291_v19  ;;  %v331_v28 = vadd.f32 %v1006_v9, %v292_v20  ;;  %v332_v29 = vadd.f32 %v1006_v9, %v293_v21  ;;  %v877_v18 = vld [vmem:[%s992_s19 + $0x50] sm:$0xff]  }
  0x18   : > { %v357_v31 = vmax.f32 %v325_v22, 0.0  ;;  %v358_v32 = vmax.f32 %v326_v23, 0.0  ;;  %v359_v33 = vmax.f32 %v327_v24, 0.0  ;;  %v360_v34 = vmax.f32 %v328_v25, 0.0  ;;  %v878_v23 = vld [vmem:[%s992_s19 + $0x58] sm:$0xff]  }
  0x19   : > { %v361_v36 = vmax.f32 %v329_v26, 0.0  ;;  %v362_v37 = vmax.f32 %v330_v27, 0.0  ;;  %v363_v38 = vmax.f32 %v331_v28, 0.0  ;;  %v364_v39 = vmax.f32 %v332_v29, 0.0 }
  0x1a   : > { %v791_v41 = vpack.c.bf16 %v358_v32, %v357_v31  ;;  %v796_v42 = vpack.c.bf16 %v360_v34, %v359_v33  ;;  %v742_v43 = vunpack.c.l.bf16 %v871_v30  ;;  %v743_v44 = vunpack.c.h.bf16 %v871_v30 }
  0x1b   : > { %v801_v46 = vpack.c.bf16 %v362_v37, %v361_v36  ;;  %v806_v47 = vpack.c.bf16 %v364_v39, %v363_v38  ;;  %v746_v48 = vunpack.c.l.bf16 %v872_v35  ;;  %v747_v49 = vunpack.c.h.bf16 %v872_v35 }
  0x1c   : > { %792 = vst [vmem:[%s1031_s26] sm:$0xff] %v791_v41   ;;  %883 = vst [vmem:[%s1031_s26 + $0x8] sm:$0xff] %v796_v42   ;;  %v294_v50 = vmul.f32 %v742_v43, %v997_v0  ;;  %v295_v51 = vmul.f32 %v743_v44, %v997_v0  ;;  %v750_v52 = vunpack.c.l.bf16 %v873_v40  ;;  %v751_v53 = vunpack.c.h.bf16 %v873_v40  ;;  %v879_v40 = vld [vmem:[%s992_s19 + $0x60] sm:$0xff]  }
  0x1d   : > { %884 = vst [vmem:[%s1031_s26 + $0x10] sm:$0xff] %v801_v46   ;;  %885 = vst [vmem:[%s1031_s26 + $0x18] sm:$0xff] %v806_v47   ;;  %v296_v54 = vmul.f32 %v746_v48, %v997_v0  ;;  %v297_v55 = vmul.f32 %v747_v49, %v997_v0  ;;  %v754_v56 = vunpack.c.l.bf16 %v874_v45  ;;  %v755_v57 = vunpack.c.h.bf16 %v874_v45 }
  0x1e   : > { %v333_v58 = vadd.f32 %v1006_v9, %v294_v50  ;;  %v334_v59 = vadd.f32 %v1006_v9, %v295_v51  ;;  %v298_v60 = vmul.f32 %v750_v52, %v997_v0  ;;  %v299_v61 = vmul.f32 %v751_v53, %v997_v0  ;;  %v880_v53 = vld [vmem:[%s992_s19 + $0x68] sm:$0xff]  }
  0x1f   : > { %v335_v62 = vadd.f32 %v1006_v9, %v296_v54  ;;  %v336_v63 = vadd.f32 %v1006_v9, %v297_v55  ;;  %v300_v1 = vmul.f32 %v754_v56, %v997_v0  ;;  %v301_v2 = vmul.f32 %v755_v57, %v997_v0 }
  0x20   : > { %v365_v4 = vmax.f32 %v333_v58, 0.0  ;;  %v366_v5 = vmax.f32 %v334_v59, 0.0  ;;  %v337_v6 = vadd.f32 %v1006_v9, %v298_v60  ;;  %v338_v7 = vadd.f32 %v1006_v9, %v299_v61  ;;  %v881_v58 = vld [vmem:[%s992_s19 + $0x70] sm:$0xff]  }
  0x21   : > { %v367_v8 = vmax.f32 %v335_v62, 0.0  ;;  %v368_v10 = vmax.f32 %v336_v63, 0.0  ;;  %v339_v11 = vadd.f32 %v1006_v9, %v300_v1  ;;  %v340_v12 = vadd.f32 %v1006_v9, %v301_v2  ;;  %v882_v63 = vld [vmem:[%s992_s19 + $0x78] sm:$0xff]  }
  0x22   : > { %v811_v14 = vpack.c.bf16 %v366_v5, %v365_v4  ;;  %v369_v15 = vmax.f32 %v337_v6, 0.0  ;;  %v370_v16 = vmax.f32 %v338_v7, 0.0  ;;  %v758_v17 = vunpack.c.l.bf16 %v875_v3 }
  0x23   : > { %v816_v19 = vpack.c.bf16 %v368_v10, %v367_v8  ;;  %v371_v20 = vmax.f32 %v339_v11, 0.0  ;;  %v372_v21 = vmax.f32 %v340_v12, 0.0  ;;  %v759_v22 = vunpack.c.h.bf16 %v875_v3 }
  0x24   : > { %886 = vst [vmem:[%s1031_s26 + $0x20] sm:$0xff] %v811_v14   ;;  %v821_v24 = vpack.c.bf16 %v370_v16, %v369_v15  ;;  %v302_v25 = vmul.f32 %v758_v17, %v997_v0  ;;  %v762_v26 = vunpack.c.l.bf16 %v876_v13  ;;  %v763_v27 = vunpack.c.h.bf16 %v876_v13 }
  0x25   : > { %887 = vst [vmem:[%s1031_s26 + $0x28] sm:$0xff] %v816_v19   ;;  %v826_v28 = vpack.c.bf16 %v372_v21, %v371_v20  ;;  %v303_v29 = vmul.f32 %v759_v22, %v997_v0  ;;  %v766_v30 = vunpack.c.l.bf16 %v877_v18  ;;  %v767_v31 = vunpack.c.h.bf16 %v877_v18 }
  0x26   : > { %888 = vst [vmem:[%s1031_s26 + $0x30] sm:$0xff] %v821_v24   ;;  %v341_v32 = vadd.f32 %v1006_v9, %v302_v25  ;;  %v304_v33 = vmul.f32 %v762_v26, %v997_v0  ;;  %v305_v34 = vmul.f32 %v763_v27, %v997_v0  ;;  %v770_v35 = vunpack.c.l.bf16 %v878_v23 }
  0x27   : > { %889 = vst [vmem:[%s1031_s26 + $0x38] sm:$0xff] %v826_v28   ;;  %v342_v36 = vadd.f32 %v1006_v9, %v303_v29  ;;  %v306_v37 = vmul.f32 %v766_v30, %v997_v0  ;;  %v307_v38 = vmul.f32 %v767_v31, %v997_v0  ;;  %v771_v39 = vunpack.c.h.bf16 %v878_v23 }
  0x28   : > { %v373_v41 = vmax.f32 %v341_v32, 0.0  ;;  %v343_v42 = vadd.f32 %v1006_v9, %v304_v33  ;;  %v344_v43 = vadd.f32 %v1006_v9, %v305_v34  ;;  %v308_v44 = vmul.f32 %v770_v35, %v997_v0 }
  0x29   : > { %v374_v45 = vmax.f32 %v342_v36, 0.0  ;;  %v345_v46 = vadd.f32 %v1006_v9, %v306_v37  ;;  %v346_v47 = vadd.f32 %v1006_v9, %v307_v38  ;;  %v309_v48 = vmul.f32 %v771_v39, %v997_v0 }
  0x2a   : > { %v375_v49 = vmax.f32 %v343_v42, 0.0  ;;  %v376_v50 = vmax.f32 %v344_v43, 0.0  ;;  %v347_v51 = vadd.f32 %v1006_v9, %v308_v44  ;;  %v774_v52 = vunpack.c.l.bf16 %v879_v40 }
  0x2b   : > { %v831_v54 = vpack.c.bf16 %v374_v45, %v373_v41  ;;  %v377_v55 = vmax.f32 %v345_v46, 0.0  ;;  %v378_v56 = vmax.f32 %v346_v47, 0.0  ;;  %v348_v57 = vadd.f32 %v1006_v9, %v309_v48 }
  0x2c   : > { %v836_v59 = vpack.c.bf16 %v376_v50, %v375_v49  ;;  %v379_v60 = vmax.f32 %v347_v51, 0.0  ;;  %v775_v61 = vunpack.c.h.bf16 %v879_v40  ;;  %v310_v62 = vmul.f32 %v774_v52, %v997_v0 }
  0x2d   : > { %890 = vst [vmem:[%s1031_s26 + $0x40] sm:$0xff] %v831_v54   ;;  %v841_v1 = vpack.c.bf16 %v378_v56, %v377_v55  ;;  %v380_v2 = vmax.f32 %v348_v57, 0.0  ;;  %v778_v3 = vunpack.c.l.bf16 %v880_v53  ;;  %v779_v4 = vunpack.c.h.bf16 %v880_v53 }
  0x2e   : > { %891 = vst [vmem:[%s1031_s26 + $0x48] sm:$0xff] %v836_v59   ;;  %v311_v5 = vmul.f32 %v775_v61, %v997_v0  ;;  %v349_v6 = vadd.f32 %v1006_v9, %v310_v62  ;;  %v782_v7 = vunpack.c.l.bf16 %v881_v58  ;;  %v783_v8 = vunpack.c.h.bf16 %v881_v58 }
  0x2f   : > { %892 = vst [vmem:[%s1031_s26 + $0x50] sm:$0xff] %v841_v1   ;;  %v846_v10 = vpack.c.bf16 %v380_v2, %v379_v60  ;;  %v312_v11 = vmul.f32 %v778_v3, %v997_v0  ;;  %v313_v12 = vmul.f32 %v779_v4, %v997_v0  ;;  %v786_v13 = vunpack.c.l.bf16 %v882_v63 }
  0x30   : > { %v350_v14 = vadd.f32 %v1006_v9, %v311_v5  ;;  %v381_v15 = vmax.f32 %v349_v6, 0.0  ;;  %v314_v16 = vmul.f32 %v782_v7, %v997_v0  ;;  %v315_v17 = vmul.f32 %v783_v8, %v997_v0 }
  0x31   : > { %893 = vst [vmem:[%s1031_s26 + $0x58] sm:$0xff] %v846_v10   ;;  %v351_v18 = vadd.f32 %v1006_v9, %v312_v11  ;;  %v352_v19 = vadd.f32 %v1006_v9, %v313_v12  ;;  %v787_v20 = vunpack.c.h.bf16 %v882_v63  ;;  %v316_v21 = vmul.f32 %v786_v13, %v997_v0 }
  0x32   : > { %v382_v22 = vmax.f32 %v350_v14, 0.0  ;;  %v353_v23 = vadd.f32 %v1006_v9, %v314_v16  ;;  %v354_v24 = vadd.f32 %v1006_v9, %v315_v17 }
  0x33   : > { %v383_v25 = vmax.f32 %v351_v18, 0.0  ;;  %v384_v26 = vmax.f32 %v352_v19, 0.0  ;;  %v317_v27 = vmul.f32 %v787_v20, %v997_v0  ;;  %v355_v28 = vadd.f32 %v1006_v9, %v316_v21 }
  0x34   : > { %v851_v29 = vpack.c.bf16 %v382_v22, %v381_v15  ;;  %v385_v30 = vmax.f32 %v353_v23, 0.0  ;;  %v386_v31 = vmax.f32 %v354_v24, 0.0 }
  0x35   : > { %v856_v32 = vpack.c.bf16 %v384_v26, %v383_v25  ;;  %v356_v33 = vadd.f32 %v1006_v9, %v317_v27  ;;  %v387_v34 = vmax.f32 %v355_v28, 0.0 }
  0x36   : > { %894 = vst [vmem:[%s1031_s26 + $0x60] sm:$0xff] %v851_v29   ;;  %v861_v35 = vpack.c.bf16 %v386_v31, %v385_v30 }
  0x37   : > { %895 = vst [vmem:[%s1031_s26 + $0x68] sm:$0xff] %v856_v32   ;;  %v388_v36 = vmax.f32 %v356_v33, 0.0 }
  0x38   : > { %896 = vst [vmem:[%s1031_s26 + $0x70] sm:$0xff] %v861_v35  }
  0x39   : > { %v866_v37 = vpack.c.bf16 %v388_v36, %v387_v34 }
  0x3b   : > { %897 = vst [vmem:[%s1031_s26 + $0x78] sm:$0xff] %v866_v37  }
  0x3c PF: > { %s13_s14 = sadd.s32 1, %s944_s14   ;;  %s1120_s12 = smov %s940_s13 }
  0x3d   : > { %p10_p5 = scmp.ge.s32.totalorder %s13_s14, 4   ;;  %s1121_s13 = smov %s1123_s15 }
  0x3f   :  { %12 = sbr.rel (!%p10_p5) target bundleno = 2 (0x2), region = 62 }

// kernel: unet_conv2_forward.7
= control target key start
LH: loop header
LB: loop body
LE: loop exit
PB: predicated region body
PF: predicated region fallthrough
CT: control target
= control target key end

     0   :  { %s679_s12 = smov 0   ;;  %s681_s13 = smov 0   ;;  %s842_s0 = inlined_call_operand.vmem [shape: f32[1,128], index: 0, kind: input, shape index: {}]   ;;  %s843_s1 = inlined_call_operand.vmem [shape: f32[1,128], index: 1, kind: input, shape index: {}]   ;;  %s844_s2 = inlined_call_operand.vmem [shape: bf16[2,16,16,128], index: 2, kind: input, shape index: {}]   ;;  %s845_s3 = inlined_call_operand.vmem [shape: f32[2,16,16,128], index: 3, kind: output, shape index: {}]  }
   0x1   :  { %s683_s14 = smov 0  }
   0x2 LB: > { %s25_s15 = sadd.s32 1, %s653_s13  ;;  %p521_p0 = scmp.ge.s32.totalorder %s657_s14, 1  ;;  %s657_s14 = sphi %s683_s14, %s13_s14   ;;  %s653_s13 = sphi %s681_s13, %s847_s13   ;;  %s649_s12 = sphi %s679_s12, %s846_s12  }
   0x3   : > { %p27_p1 = scmp.ge.s32.totalorder %s25_s15, 2  ;;  %p159_p2 = scmp.lt.s32.totalorder %s657_s14, 3 }
   0x5   : > { %s849_s15 = smov (%p27_p1, %s25_s15), 0  ;;  %p160_p3 = pnand %p521_p0, %p159_p2 }
   0x6   : > { %p194_p4 = scmp.lt.s32.totalorder (!%p160_p3), %s649_s12, 1  ;;  %v708_v0 = vld [vmem:[%s842_s0] ss:$0 sm:$0xff] (!%p160_p3) }
   0x7   : > { %163 = sbr.rel (%p160_p3) target bundleno = 54 (0x36), region = 32  ;;  %v717_v9 = vld [vmem:[%s843_s1] ss:$0 sm:$0xff] (!%p160_p3) }
   0xe   : > { %s851_s12 = smov (!%p194_p4, %s649_s12), 1 }
   0xf   : > { %s530_s16 = sshll.u32 %s851_s12, 7  ;;  %s531_s24 = sshll.u32 %s851_s12, 8 }
  0x10   : > { %s703_s19 = scalar_lea.vmem %s844_s2, %s530_s16  ;;  %s735_s27 = scalar_lea.vmem %s845_s3, %s531_s24 }
  0x11   : > { %v533_v1 = vld [vmem:[%s703_s19] sm:$0xff]   ;;  %v596_v2 = vld [vmem:[%s703_s19 + $0x8] sm:$0xff]   ;;  %v597_v3 = vld [vmem:[%s703_s19 + $0x10] sm:$0xff]  }
  0x12   : > { %v534_v4 = vunpack.c.l.bf16 %v533_v1  ;;  %v535_v5 = vunpack.c.h.bf16 %v533_v1  ;;  %v538_v6 = vunpack.c.l.bf16 %v596_v2  ;;  %v539_v7 = vunpack.c.h.bf16 %v596_v2  ;;  %v598_v8 = vld [vmem:[%s703_s19 + $0x18] sm:$0xff]   ;;  %v599_v30 = vld [vmem:[%s703_s19 + $0x20] sm:$0xff]   ;;  %v600_v31 = vld [vmem:[%s703_s19 + $0x28] sm:$0xff]  }
  0x13   : > { %v542_v10 = vunpack.c.l.bf16 %v597_v3  ;;  %v543_v11 = vunpack.c.h.bf16 %v597_v3  ;;  %v546_v12 = vunpack.c.l.bf16 %v598_v8  ;;  %v547_v13 = vunpack.c.h.bf16 %v598_v8  ;;  %v601_v36 = vld [vmem:[%s703_s19 + $0x30] sm:$0xff]   ;;  %v602_v37 = vld [vmem:[%s703_s19 + $0x38] sm:$0xff]   ;;  %v603_v3 = vld [vmem:[%s703_s19 + $0x40] sm:$0xff]  }
  0x14   : > { %v286_v14 = vmul.f32 %v534_v4, %v708_v0  ;;  %v287_v15 = vmul.f32 %v535_v5, %v708_v0  ;;  %v288_v16 = vmul.f32 %v538_v6, %v708_v0  ;;  %v289_v17 = vmul.f32 %v539_v7, %v708_v0  ;;  %v604_v4 = vld [vmem:[%s703_s19 + $0x48] sm:$0xff]  }
  0x15   : > { %v290_v18 = vmul.f32 %v542_v10, %v708_v0  ;;  %v291_v19 = vmul.f32 %v543_v11, %v708_v0  ;;  %v292_v20 = vmul.f32 %v546_v12, %v708_v0  ;;  %v293_v21 = vmul.f32 %v547_v13, %v708_v0  ;;  %v605_v10 = vld [vmem:[%s703_s19 + $0x50] sm:$0xff]   ;;  %v606_v11 = vld [vmem:[%s703_s19 + $0x58] sm:$0xff]  }
  0x16   : > { %v325_v22 = vadd.f32 %v717_v9, %v286_v14  ;;  %v326_v23 = vadd.f32 %v717_v9, %v287_v15  ;;  %v327_v24 = vadd.f32 %v717_v9, %v288_v16  ;;  %v328_v25 = vadd.f32 %v717_v9, %v289_v17 }
  0x17   : > { %v329_v26 = vadd.f32 %v717_v9, %v290_v18  ;;  %v330_v27 = vadd.f32 %v717_v9, %v291_v19  ;;  %v331_v28 = vadd.f32 %v717_v9, %v292_v20  ;;  %v332_v29 = vadd.f32 %v717_v9, %v293_v21 }
  0x18   : > { %v357_v32 = vmax.f32 %v325_v22, 0.0  ;;  %v358_v33 = vmax.f32 %v326_v23, 0.0  ;;  %v359_v34 = vmax.f32 %v327_v24, 0.0  ;;  %v360_v35 = vmax.f32 %v328_v25, 0.0 }
  0x19   : > { %v361_v38 = vmax.f32 %v329_v26, 0.0  ;;  %v362_v39 = vmax.f32 %v330_v27, 0.0  ;;  %v363_v40 = vmax.f32 %v331_v28, 0.0  ;;  %v364_v41 = vmax.f32 %v332_v29, 0.0 }
  0x1a   : > { %389 = vst [vmem:[%s735_s27] sm:$0xff] %v357_v32  ;;  %390 = vst [vmem:[%s735_s27 + $0x8] sm:$0xff] %v358_v33  ;;  %v550_v42 = vunpack.c.l.bf16 %v599_v30  ;;  %v551_v43 = vunpack.c.h.bf16 %v599_v30  ;;  %v554_v44 = vunpack.c.l.bf16 %v600_v31  ;;  %v555_v45 = vunpack.c.h.bf16 %v600_v31 }
  0x1b   : > { %391 = vst [vmem:[%s735_s27 + $0x10] sm:$0xff] %v359_v34  ;;  %392 = vst [vmem:[%s735_s27 + $0x18] sm:$0xff] %v360_v35  ;;  %v558_v46 = vunpack.c.l.bf16 %v601_v36  ;;  %v559_v47 = vunpack.c.h.bf16 %v601_v36  ;;  %v562_v48 = vunpack.c.l.bf16 %v602_v37  ;;  %v563_v49 = vunpack.c.h.bf16 %v602_v37 }
  0x1c   : > { %393 = vst [vmem:[%s735_s27 + $0x20] sm:$0xff] %v361_v38  ;;  %394 = vst [vmem:[%s735_s27 + $0x28] sm:$0xff] %v362_v39  ;;  %v294_v50 = vmul.f32 %v550_v42, %v708_v0  ;;  %v295_v51 = vmul.f32 %v551_v43, %v708_v0  ;;  %v296_v52 = vmul.f32 %v554_v44, %v708_v0  ;;  %v566_v16 = vunpack.c.l.bf16 %v603_v3 }
  0x1d   : > { %395 = vst [vmem:[%s735_s27 + $0x30] sm:$0xff] %v363_v40  ;;  %396 = vst [vmem:[%s735_s27 + $0x38] sm:$0xff] %v364_v41  ;;  %v297_v53 = vmul.f32 %v555_v45, %v708_v0  ;;  %v298_v54 = vmul.f32 %v558_v46, %v708_v0  ;;  %v299_v55 = vmul.f32 %v559_v47, %v708_v0  ;;  %v567_v17 = vunpack.c.h.bf16 %v603_v3  ;;  %v607_v40 = vld [vmem:[%s703_s19 + $0x60] sm:$0xff]   ;;  %v608_v41 = vld [vmem:[%s703_s19 + $0x68] sm:$0xff]  }
  0x1e   : > { %v300_v56 = vmul.f32 %v562_v48, %v708_v0  ;;  %v301_v57 = vmul.f32 %v563_v49, %v708_v0  ;;  %v333_v58 = vadd.f32 %v717_v9, %v294_v50  ;;  %v334_v59 = vadd.f32 %v717_v9, %v295_v51  ;;  %v609_v46 = vld [vmem:[%s703_s19 + $0x70] sm:$0xff]   ;;  %v610_v47 = vld [vmem:[%s703_s19 + $0x78] sm:$0xff]  }
  0x1f   : > { %v335_v60 = vadd.f32 %v717_v9, %v296_v52  ;;  %v336_v61 = vadd.f32 %v717_v9, %v297_v53  ;;  %v337_v62 = vadd.f32 %v717_v9, %v298_v54  ;;  %v338_v63 = vadd.f32 %v717_v9, %v299_v55 }
  0x20   : > { %v339_v1 = vadd.f32 %v717_v9, %v300_v56  ;;  %v340_v2 = vadd.f32 %v717_v9, %v301_v57  ;;  %v365_v5 = vmax.f32 %v333_v58, 0.0  ;;  %v366_v6 = vmax.f32 %v334_v59, 0.0 }
  0x21   : > { %v367_v7 = vmax.f32 %v335_v60, 0.0  ;;  %v368_v8 = vmax.f32 %v336_v61, 0.0  ;;  %v369_v12 = vmax.f32 %v337_v62, 0.0  ;;  %v370_v13 = vmax.f32 %v338_v63, 0.0 }
  0x22   : > { %v371_v14 = vmax.f32 %v339_v1, 0.0  ;;  %v372_v15 = vmax.f32 %v340_v2, 0.0  ;;  %397 = vst [vmem:[%s735_s27 + $0x40] sm:$0xff] %v365_v5  ;;  %398 = vst [vmem:[%s735_s27 + $0x48] sm:$0xff] %v366_v6  ;;  %v570_v18 = vunpack.c.l.bf16 %v604_v4  ;;  %v571_v19 = vunpack.c.h.bf16 %v604_v4 }
  0x23   : > { %399 = vst [vmem:[%s735_s27 + $0x50] sm:$0xff] %v367_v7  ;;  %400 = vst [vmem:[%s735_s27 + $0x58] sm:$0xff] %v368_v8  ;;  %v574_v20 = vunpack.c.l.bf16 %v605_v10  ;;  %v575_v21 = vunpack.c.h.bf16 %v605_v10  ;;  %v578_v22 = vunpack.c.l.bf16 %v606_v11  ;;  %v579_v23 = vunpack.c.h.bf16 %v606_v11 }
  0x24   : > { %401 = vst [vmem:[%s735_s27 + $0x60] sm:$0xff] %v369_v12  ;;  %402 = vst [vmem:[%s735_s27 + $0x68] sm:$0xff] %v370_v13  ;;  %v302_v24 = vmul.f32 %v566_v16, %v708_v0  ;;  %v303_v25 = vmul.f32 %v567_v17, %v708_v0  ;;  %v304_v26 = vmul.f32 %v570_v18, %v708_v0  ;;  %v582_v52 = vunpack.c.l.bf16 %v607_v40 }
  0x25   : > { %403 = vst [vmem:[%s735_s27 + $0x70] sm:$0xff] %v371_v14  ;;  %404 = vst [vmem:[%s735_s27 + $0x78] sm:$0xff] %v372_v15  ;;  %v305_v27 = vmul.f32 %v571_v19, %v708_v0  ;;  %v306_v28 = vmul.f32 %v574_v20, %v708_v0  ;;  %v307_v29 = vmul.f32 %v575_v21, %v708_v0  ;;  %v583_v53 = vunpack.c.h.bf16 %v607_v40 }
  0x26   : > { %v308_v30 = vmul.f32 %v578_v22, %v708_v0  ;;  %v309_v31 = vmul.f32 %v579_v23, %v708_v0  ;;  %v341_v32 = vadd.f32 %v717_v9, %v302_v24  ;;  %v342_v33 = vadd.f32 %v717_v9, %v303_v25 }
  0x27   : > { %v343_v34 = vadd.f32 %v717_v9, %v304_v26  ;;  %v344_v35 = vadd.f32 %v717_v9, %v305_v27  ;;  %v345_v36 = vadd.f32 %v717_v9, %v306_v28  ;;  %v346_v37 = vadd.f32 %v717_v9, %v307_v29 }
  0x28   : > { %v347_v38 = vadd.f32 %v717_v9, %v308_v30  ;;  %v348_v39 = vadd.f32 %v717_v9, %v309_v31  ;;  %v373_v42 = vmax.f32 %v341_v32, 0.0  ;;  %v374_v43 = vmax.f32 %v342_v33, 0.0 }
  0x29   : > { %v375_v44 = vmax.f32 %v343_v34, 0.0  ;;  %v376_v45 = vmax.f32 %v344_v35, 0.0  ;;  %v377_v48 = vmax.f32 %v345_v36, 0.0  ;;  %v378_v49 = vmax.f32 %v346_v37, 0.0 }
  0x2a   : > { %v379_v50 = vmax.f32 %v347_v38, 0.0  ;;  %v380_v51 = vmax.f32 %v348_v39, 0.0  ;;  %405 = vst [vmem:[%s735_s27 + $0x80] sm:$0xff] %v373_v42  ;;  %406 = vst [vmem:[%s735_s27 + $0x88] sm:$0xff] %v374_v43  ;;  %v586_v54 = vunpack.c.l.bf16 %v608_v41  ;;  %v587_v55 = vunpack.c.h.bf16 %v608_v41 }
  0x2b   : > { %407 = vst [vmem:[%s735_s27 + $0x90] sm:$0xff] %v375_v44  ;;  %408 = vst [vmem:[%s735_s27 + $0x98] sm:$0xff] %v376_v45  ;;  %v590_v56 = vunpack.c.l.bf16 %v609_v46  ;;  %v591_v57 = vunpack.c.h.bf16 %v609_v46  ;;  %v594_v58 = vunpack.c.l.bf16 %v610_v47  ;;  %v595_v59 = vunpack.c.h.bf16 %v610_v47 }
  0x2c   : > { %409 = vst [vmem:[%s735_s27 + $0xa0] sm:$0xff] %v377_v48  ;;  %410 = vst [vmem:[%s735_s27 + $0xa8] sm:$0xff] %v378_v49  ;;  %v310_v60 = vmul.f32 %v582_v52, %v708_v0  ;;  %v311_v61 = vmul.f32 %v583_v53, %v708_v0  ;;  %v312_v62 = vmul.f32 %v586_v54, %v708_v0 }
  0x2d   : > { %411 = vst [vmem:[%s735_s27 + $0xb0] sm:$0xff] %v379_v50  ;;  %412 = vst [vmem:[%s735_s27 + $0xb8] sm:$0xff] %v380_v51  ;;  %v313_v63 = vmul.f32 %v587_v55, %v708_v0  ;;  %v314_v1 = vmul.f32 %v590_v56, %v708_v0  ;;  %v315_v2 = vmul.f32 %v591_v57, %v708_v0 }
  0x2e   : > { %v316_v3 = vmul.f32 %v594_v58, %v708_v0  ;;  %v317_v4 = vmul.f32 %v595_v59, %v708_v0  ;;  %v349_v5 = vadd.f32 %v717_v9, %v310_v60  ;;  %v350_v6 = vadd.f32 %v717_v9, %v311_v61 }
  0x2f   : > { %v351_v7 = vadd.f32 %v717_v9, %v312_v62  ;;  %v352_v8 = vadd.f32 %v717_v9, %v313_v63  ;;  %v353_v10 = vadd.f32 %v717_v9, %v314_v1  ;;  %v354_v11 = vadd.f32 %v717_v9, %v315_v2 }
  0x30   : > { %v355_v0 = vadd.f32 %v717_v9, %v316_v3  ;;  %v356_v12 = vadd.f32 %v717_v9, %v317_v4  ;;  %v381_v13 = vmax.f32 %v349_v5, 0.0  ;;  %v382_v14 = vmax.f32 %v350_v6, 0.0 }
  0x31   : > { %v383_v15 = vmax.f32 %v351_v7, 0.0  ;;  %v384_v16 = vmax.f32 %v352_v8, 0.0  ;;  %v385_v17 = vmax.f32 %v353_v10, 0.0  ;;  %v386_v18 = vmax.f32 %v354_v11, 0.0 }
  0x32   : > { %v387_v19 = vmax.f32 %v355_v0, 0.0  ;;  %v388_v20 = vmax.f32 %v356_v12, 0.0  ;;  %413 = vst [vmem:[%s735_s27 + $0xc0] sm:$0xff] %v381_v13  ;;  %414 = vst [vmem:[%s735_s27 + $0xc8] sm:$0xff] %v382_v14 }
  0x33   : > { %415 = vst [vmem:[%s735_s27 + $0xd0] sm:$0xff] %v383_v15  ;;  %416 = vst [vmem:[%s735_s27 + $0xd8] sm:$0xff] %v384_v16 }
  0x34   : > { %417 = vst [vmem:[%s735_s27 + $0xe0] sm:$0xff] %v385_v17  ;;  %418 = vst [vmem:[%s735_s27 + $0xe8] sm:$0xff] %v386_v18 }
  0x35   : > { %419 = vst [vmem:[%s735_s27 + $0xf0] sm:$0xff] %v387_v19  ;;  %420 = vst [vmem:[%s735_s27 + $0xf8] sm:$0xff] %v388_v20 }
  0x36 PF: > { %s13_s14 = sadd.s32 1, %s657_s14   ;;  %s846_s12 = smov %s653_s13 }
  0x37   : > { %p10_p5 = scmp.ge.s32.totalorder %s13_s14, 4   ;;  %s847_s13 = smov %s849_s15 }
  0x39   :  { %12 = sbr.rel (!%p10_p5) target bundleno = 2 (0x2), region = 62 }

</bundles_post_ra>
